<compile_context>
chip_gen: v5e
topology: v5e:2x2
jax: 0.10.0
libtpu: 0.0.40
codegen_flags: <defaults>
</compile_context>

<pallas_src>
import jax
import jax.numpy as jnp
from jax.experimental import pallas as pl
from jax.experimental.pallas import tpu as pltpu


def _net_kernel(x_ref, w1_ref, b1_ref, w2_ref, b2_ref, out_ref):
    # x_ref : (S, TB)   activations, batch on the lane axis
    # w1_ref: (H, S)    fc1 weight (PyTorch layout, no transpose needed)
    # b1_ref: (H, 1)
    # w2_ref: (A, H)    out-layer weight
    # b2_ref: (A, 1)
    # out_ref: (A, TB)  y^T tile (lane-dense last dim)
    s, tb = x_ref.shape
    xT = x_ref[...]
    w1 = w1_ref[...]

    # fc1 as S (=4) rank-1 multiply-adds on the VPU (K=4 is too small for MXU).
    acc = w1[:, 0:1] * xT[0:1, :] + b1_ref[...]
    for k in range(1, s):            # static unroll, S is tiny & compile-time
        acc = acc + w1[:, k:k + 1] * xT[k:k + 1, :]
    h = jnp.maximum(acc, 0.0)        # ReLU, (H, TB)

    # out layer: (A, H) @ (H, TB) on the MXU, plus lane-broadcast bias.
    o = jnp.dot(w2_ref[...], h, preferred_element_type=jnp.float32)
    out_ref[...] = (o + b2_ref[...]).astype(out_ref.dtype)


def prepare_params(w1, b1, w2, b2):
    """One-time parameter prep (call where the params live, NOT per forward).

    PyTorch nn.Linear layout in:
      w1: (n_hidden, n_states), b1: (n_hidden,)
      w2: (n_actions, n_hidden), b2: (n_actions,)
    Returns kernel-ready f32 arrays: w1 (H,S), b1 (H,1), w2 (A,H), b2 (A,1).
    """
    w1 = jnp.asarray(w1, jnp.float32)
    b1 = jnp.asarray(b1, jnp.float32).reshape(-1, 1)
    w2 = jnp.asarray(w2, jnp.float32)
    b2 = jnp.asarray(b2, jnp.float32).reshape(-1, 1)
    return w1, b1, w2, b2


_MAX_TILE = 2048  # lane tile cap; (S+H+A)*2048*4B double-buffered is <1 MiB


def _round_up(x, m):
    return (x + m - 1) // m * m


def _choose_tiling(b):
    """Return (padded_batch, lane_tile).

    b <= 256: one full-array block (block dim == array dim needs no 128
    divisibility, and grid=(1,) keeps overhead minimal).
    b  > 256: pad to a 128-multiple tile, keep >= 2 grid steps so the
    'parallel' axis shards across v7x's 2 TensorCores, cap the tile so the
    grid never becomes hundreds of ~0.35us steps.
    """
    if b <= 256:
        return b, b
    n_steps = max(2, pl.cdiv(b, _MAX_TILE))
    tile = _round_up(pl.cdiv(b, n_steps), 128)
    return n_steps * tile, tile


def net_forward_t(xT, w1, b1, w2, b2):
    """Transposed forward.  xT: (S, B) f32 -> y^T: (A, B) f32."""
    S, B = xT.shape
    H, S2 = w1.shape
    A, H2 = w2.shape
    assert S2 == S and H2 == H and b1.shape == (H, 1) and b2.shape == (A, 1)

    Bp, tb = _choose_tiling(B)
    if Bp != B:
        xT = jnp.pad(xT, ((0, 0), (0, Bp - B)))

    yT = pl.pallas_call(
        _net_kernel,
        out_shape=jax.ShapeDtypeStruct((A, Bp), jnp.float32),
        grid_spec=pltpu.PrefetchScalarGridSpec(
            num_scalar_prefetch=0,
            grid=(Bp // tb,),
            in_specs=[
                pl.BlockSpec((S, tb), lambda i: (0, i)),   # x^T  (lane-dense)
                pl.BlockSpec((H, S), lambda i: (0, 0)),    # W1
                pl.BlockSpec((H, 1), lambda i: (0, 0)),    # b1
                pl.BlockSpec((A, H), lambda i: (0, 0)),    # W2
                pl.BlockSpec((A, 1), lambda i: (0, 0)),    # b2
            ],
            out_specs=pl.BlockSpec((A, tb), lambda i: (0, i)),
        ),
        compiler_params=pltpu.CompilerParams(
            # Shards the batch axis across the 2 TCs on v7x when grid >= 2;
            # harmless (single-TC) on v5e/v6e.
            dimension_semantics=("parallel",)),
    )(xT, w1, b1, w2, b2)

    if Bp != B:
        yT = yT[:, :B]
    return yT


def net_forward(x, w1, b1, w2, b2):
    """Module-compatible interface: x (B, n_states) -> (B, n_actions)."""
    return net_forward_t(x.T, w1, b1, w2, b2).T


def _reference(x, w1, b1_vec, w2, b2_vec):
    h = jnp.maximum(x @ w1.T + b1_vec, 0.0)
    return h @ w2.T + b2_vec


if __name__ == "__main__":
    # DQN head shapes: n_states=4, n_hidden=32, n_actions=2 (binary action).
    n_states, n_hidden, n_actions = 4, 32, 2

    key = jax.random.PRNGKey(0)
    kx, kw1, kb1, kw2, kb2, kx2 = jax.random.split(key, 6)

    w1 = jax.random.normal(kw1, (n_hidden, n_states), dtype=jnp.float32) * 0.1
    b1 = jax.random.normal(kb1, (n_hidden,), dtype=jnp.float32) * 0.1
    w2 = jax.random.normal(kw2, (n_actions, n_hidden), dtype=jnp.float32) * 0.1
    b2 = jax.random.normal(kb2, (n_actions,), dtype=jnp.float32) * 0.1

    # One-time layout work (static across forward calls).
    W1, B1, W2, B2 = jax.block_until_ready(prepare_params(w1, b1, w2, b2))

    # Case 1: replay-batch of 32 -> single full-array block, grid=(1,).
    B = 32
    x = jax.random.normal(kx, (B, n_states), dtype=jnp.float32)
    y = jax.block_until_ready(net_forward(x, W1, B1, W2, B2))
    y_ref = _reference(x, w1, b1, w2, b2)
    assert y.shape == (B, n_actions)
    assert jnp.allclose(y, y_ref, atol=1e-5, rtol=1e-5)

    # Case 2: awkward large batch -> padded 128-multiple tiles, grid=(2,).
    B2_ = 1000
    x2 = jax.random.normal(kx2, (B2_, n_states), dtype=jnp.float32)
    y2 = jax.block_until_ready(net_forward(x2, W1, B1, W2, B2))
    y2_ref = _reference(x2, w1, b1, w2, b2)
    assert y2.shape == (B2_, n_actions)
    assert jnp.allclose(y2, y2_ref, atol=1e-5, rtol=1e-5)

    print("KERNEL_OK")
</pallas_src>

<mosaic_0001>
module attributes {stable_mosaic.version = 11 : i64} {
  func.func @_net_kernel(%arg0: i32, %arg1: memref<4x32xf32, #tpu.memory_space<vmem>>, %arg2: memref<32x4xf32, #tpu.memory_space<vmem>>, %arg3: memref<32x1xf32, #tpu.memory_space<vmem>>, %arg4: memref<2x32xf32, #tpu.memory_space<vmem>>, %arg5: memref<2x1xf32, #tpu.memory_space<vmem>>, %arg6: memref<2x32xf32, #tpu.memory_space<vmem>>) attributes {dimension_semantics = [#tpu.dimension_semantics<parallel>], iteration_bounds = array<i64: 1>, scalar_prefetch = 0 : i64, scratch_operands = 0 : i64, tpu.core_type = #tpu.core_type<tc>, window_params = [{transform_indices = @transform_0, window_bounds = array<i64: 4, 32>}, {pipeline_mode = #tpu.pipeline_mode<synchronous>, transform_indices = @transform_1, window_bounds = array<i64: 32, 4>}, {pipeline_mode = #tpu.pipeline_mode<synchronous>, transform_indices = @transform_2, window_bounds = array<i64: 32, 1>}, {pipeline_mode = #tpu.pipeline_mode<synchronous>, transform_indices = @transform_3, window_bounds = array<i64: 2, 32>}, {pipeline_mode = #tpu.pipeline_mode<synchronous>, transform_indices = @transform_4, window_bounds = array<i64: 2, 1>}, {transform_indices = @transform_5, window_bounds = array<i64: 2, 32>}]} {
    %c0 = arith.constant 0 : index
    %c0_0 = arith.constant 0 : index
    %0 = vector.load %arg1[%c0, %c0_0] : memref<4x32xf32, #tpu.memory_space<vmem>>, vector<4x32xf32>
    %c0_1 = arith.constant 0 : index
    %c0_2 = arith.constant 0 : index
    %1 = vector.load %arg2[%c0_1, %c0_2] : memref<32x4xf32, #tpu.memory_space<vmem>>, vector<32x4xf32>
    %2 = vector.extract_strided_slice %1 {offsets = [0, 0], sizes = [32, 1], strides = [1, 1]} : vector<32x4xf32> to vector<32x1xf32>
    %3 = vector.extract_strided_slice %0 {offsets = [0, 0], sizes = [1, 32], strides = [1, 1]} : vector<4x32xf32> to vector<1x32xf32>
    %4 = vector.broadcast %2 : vector<32x1xf32> to vector<32x32xf32>
    %5 = vector.broadcast %3 : vector<1x32xf32> to vector<32x32xf32>
    %6 = arith.mulf %4, %5 : vector<32x32xf32>
    %c0_3 = arith.constant 0 : index
    %c0_4 = arith.constant 0 : index
    %7 = vector.load %arg3[%c0_3, %c0_4] : memref<32x1xf32, #tpu.memory_space<vmem>>, vector<32x1xf32>
    %8 = vector.broadcast %7 : vector<32x1xf32> to vector<32x32xf32>
    %9 = arith.addf %6, %8 : vector<32x32xf32>
    %10 = vector.extract_strided_slice %1 {offsets = [0, 1], sizes = [32, 1], strides = [1, 1]} : vector<32x4xf32> to vector<32x1xf32>
    %11 = vector.extract_strided_slice %0 {offsets = [1, 0], sizes = [1, 32], strides = [1, 1]} : vector<4x32xf32> to vector<1x32xf32>
    %12 = vector.broadcast %10 : vector<32x1xf32> to vector<32x32xf32>
    %13 = vector.broadcast %11 : vector<1x32xf32> to vector<32x32xf32>
    %14 = arith.mulf %12, %13 : vector<32x32xf32>
    %15 = arith.addf %9, %14 : vector<32x32xf32>
    %16 = vector.extract_strided_slice %1 {offsets = [0, 2], sizes = [32, 1], strides = [1, 1]} : vector<32x4xf32> to vector<32x1xf32>
    %17 = vector.extract_strided_slice %0 {offsets = [2, 0], sizes = [1, 32], strides = [1, 1]} : vector<4x32xf32> to vector<1x32xf32>
    %18 = vector.broadcast %16 : vector<32x1xf32> to vector<32x32xf32>
    %19 = vector.broadcast %17 : vector<1x32xf32> to vector<32x32xf32>
    %20 = arith.mulf %18, %19 : vector<32x32xf32>
    %21 = arith.addf %15, %20 : vector<32x32xf32>
    %22 = vector.extract_strided_slice %1 {offsets = [0, 3], sizes = [32, 1], strides = [1, 1]} : vector<32x4xf32> to vector<32x1xf32>
    %23 = vector.extract_strided_slice %0 {offsets = [3, 0], sizes = [1, 32], strides = [1, 1]} : vector<4x32xf32> to vector<1x32xf32>
    %24 = vector.broadcast %22 : vector<32x1xf32> to vector<32x32xf32>
    %25 = vector.broadcast %23 : vector<1x32xf32> to vector<32x32xf32>
    %26 = arith.mulf %24, %25 : vector<32x32xf32>
    %27 = arith.addf %21, %26 : vector<32x32xf32>
    %cst = arith.constant 0.000000e+00 : f32
    %28 = vector.broadcast %cst : f32 to vector<32x32xf32>
    %29 = arith.maximumf %27, %28 : vector<32x32xf32>
    %c0_5 = arith.constant 0 : index
    %c0_6 = arith.constant 0 : index
    %30 = vector.load %arg4[%c0_5, %c0_6] : memref<2x32xf32, #tpu.memory_space<vmem>>, vector<2x32xf32>
    %cst_7 = arith.constant dense<0.000000e+00> : vector<2x32xf32>
    %31 = tpu.matmul %30, %29, %cst_7 {dimension_numbers = #tpu.dot_dimension_numbers<[1], [0], [0], [1], [0, 0, 1, 1], [], []>} : vector<2x32xf32>, vector<32x32xf32>, vector<2x32xf32> -> vector<2x32xf32>
    %c0_8 = arith.constant 0 : index
    %c0_9 = arith.constant 0 : index
    %32 = vector.load %arg5[%c0_8, %c0_9] : memref<2x1xf32, #tpu.memory_space<vmem>>, vector<2x1xf32>
    %33 = vector.broadcast %32 : vector<2x1xf32> to vector<2x32xf32>
    %34 = arith.addf %31, %33 : vector<2x32xf32>
    %c0_10 = arith.constant 0 : index
    %c0_11 = arith.constant 0 : index
    %35 = vector.load %arg6[%c0_10, %c0_11] : memref<2x32xf32, #tpu.memory_space<vmem>>, vector<2x32xf32>
    tpu.vector_store %arg6[%c0_10, %c0_11], %34 {strides = array<i32>} : memref<2x32xf32, #tpu.memory_space<vmem>>, vector<2x32xf32>,
    return
  }
  func.func @transform_0(%arg0: i32) -> (i32, i32) {
    %c0_i32 = arith.constant 0 : i32
    %c0_i32_0 = arith.constant 0 : i32
    return %c0_i32, %arg0 : i32, i32
  }
  func.func @transform_1(%arg0: i32) -> (i32, i32) {
    %c0_i32 = arith.constant 0 : i32
    %c0_i32_0 = arith.constant 0 : i32
    %c0_i32_1 = arith.constant 0 : i32
    return %c0_i32, %c0_i32_0 : i32, i32
  }
  func.func @transform_2(%arg0: i32) -> (i32, i32) {
    %c0_i32 = arith.constant 0 : i32
    %c0_i32_0 = arith.constant 0 : i32
    %c0_i32_1 = arith.constant 0 : i32
    return %c0_i32, %c0_i32_0 : i32, i32
  }
  func.func @transform_3(%arg0: i32) -> (i32, i32) {
    %c0_i32 = arith.constant 0 : i32
    %c0_i32_0 = arith.constant 0 : i32
    %c0_i32_1 = arith.constant 0 : i32
    return %c0_i32, %c0_i32_0 : i32, i32
  }
  func.func @transform_4(%arg0: i32) -> (i32, i32) {
    %c0_i32 = arith.constant 0 : i32
    %c0_i32_0 = arith.constant 0 : i32
    %c0_i32_1 = arith.constant 0 : i32
    return %c0_i32, %c0_i32_0 : i32, i32
  }
  func.func @transform_5(%arg0: i32) -> (i32, i32) {
    %c0_i32 = arith.constant 0 : i32
    %c0_i32_0 = arith.constant 0 : i32
    return %c0_i32, %arg0 : i32, i32
  }
}

</mosaic_0001>

<bundles_post_ra>
// kernel: tpu_custom_call.1
= control target key start
LH: loop header
LB: loop body
LE: loop exit
PB: predicated region body
PF: predicated region fallthrough
CT: control target
= control target key end

     0   :  { %v258_v3 = vmov 0   ;;  %s329_s0 = inlined_call_operand.vmem [shape: f32[4,32], index: 0, kind: input, shape index: {}]   ;;  %s330_s1 = inlined_call_operand.vmem [shape: f32[32,4], index: 1, kind: input, shape index: {}]   ;;  %s331_s2 = inlined_call_operand.vmem [shape: f32[32,1], index: 2, kind: input, shape index: {}]   ;;  %s332_s3 = inlined_call_operand.vmem [shape: f32[2,32], index: 3, kind: input, shape index: {}]   ;;  %s333_s4 = inlined_call_operand.vmem [shape: f32[2,1], index: 4, kind: input, shape index: {}]   ;;  %s334_s5 = inlined_call_operand.hbm [shape: f32[2,32], index: 5, kind: output, shape index: {}]  }
   0x1   :  { %v54_v0 = vld [vmem:[%s331_s2 + $0x18] sm:$0xff]  ;;  %v23_v2 = vld [vmem:[%s330_s1 + $0x8] sm:$0xff]  ;;  %214 = vset.pattern.permute.xlu1 %v258_v3  ;;  %213 = vset.pattern.permute.xlu0 %v258_v3 }
   0x2   :  { %v25_v1 = vld [vmem:[%s330_s1 + $0x18] sm:$0xff]  ;;  %216 = vset.pattern.permute.xlu2 %v258_v3  ;;  %72 = vperm.xlu1 %214, %v54_v0  }
   0x3   :  { %10 = vsyncpa [#allocation3], 0  ;;  %43 = vperm.xlu0 %213, %v25_v1   ;;  %33 = vperm.xlu2 %216, %v23_v2   ;;  %v24_v4 = vld [vmem:[%s330_s1 + $0x10] sm:$0xff]  ;;  %v259_v6 = vmov 1   ;;  %v22_v7 = vld [vmem:[%s330_s1] sm:$0xff]  ;;  %v260_v8 = vmov 2  }
   0x4   :  { %v53_v5 = vld [vmem:[%s331_s2 + $0x10] sm:$0xff]  ;;  %v52_v9 = vld [vmem:[%s331_s2 + $0x8] sm:$0xff]  ;;  %v51_v10 = vld [vmem:[%s331_s2] sm:$0xff]  ;;  %v261_v11 = vmov 3   ;;  %vm165_vm0 = vcmask 261120   ;;  %s262_s11 = smov [#allocation2]  }
   0x5   :  { %v21_v23 = vld [vmem:[%s329_s0] sm:$0xf]  ;;  %s196_s12 = sshll.u32 %s262_s11, 4  ;;  %s198_s15 = sshll.u32 %s334_s5, 4  ;;  %vm189_vm1 = vcmask 254976   ;;  %s197_s12 = int_to_ptr.vmem [resolvable:$true] %s196_s12  ;;  %s199_s15 = int_to_ptr.hbm [resolvable:$true] %s198_s15 }
   0x6   :  { %v46_v24 = vperm.slane %v21_v23, 0  ;;  %v95_v27 = vperm.slane %v21_v23, 1  ;;  %v120_v31 = vperm.slane %v21_v23, 2  ;;  %v145_v39 = vperm.slane %v21_v23, 3  ;;  %v159_v57 = vld [vmem:[%s333_s4] sm:$0x3] }
   0xa   :  { %215 = vset.pattern.permute.xlu1 %v259_v6 }
   0xb   :  { %38 = vperm.xlu0 %213, %v24_v4   ;;  %92 = vperm.xlu1 %215, %v25_v1  }
   0xc   :  { %67 = vperm.xlu2 %216, %v53_v5  }
  0x13   :  { %217 = vset.pattern.permute.xlu0 %v259_v6  ;;  %218 = vset.pattern.permute.xlu1 %v260_v8 }
  0x14   :  { %88 = vperm.xlu0 %217, %v24_v4   ;;  %28 = vperm.xlu2 %216, %v22_v7  }
  0x15   :  { %117 = vperm.xlu1 %218, %v25_v1  }
  0x1c   :  { %221 = vset.pattern.permute.xlu0 %v260_v8  ;;  %220 = vset.pattern.permute.xlu2 %v259_v6 }
  0x1d   :  { %219 = vset.pattern.permute.xlu1 %v258_v3  ;;  %113 = vperm.xlu0 %221, %v24_v4  }
  0x1e   :  { %84 = vperm.xlu2 %220, %v23_v2   ;;  %62 = vperm.xlu1 %219, %v52_v9  }
  0x25   :  { %226 = vset.pattern.permute.xlu0 %v261_v11 }
  0x26   :  { %223 = vset.pattern.permute.xlu2 %v258_v3  ;;  %222 = vset.pattern.permute.xlu1 %v261_v11 }
  0x27   :  { %138 = vperm.xlu0 %226, %v24_v4   ;;  %57 = vperm.xlu2 %223, %v51_v10   ;;  %v158_v10 = vld [vmem:[%s332_s3] sm:$0x3] }
  0x28   :  { %142 = vperm.xlu1 %222, %v25_v1  }
  0x2f   :  { %225 = vset.pattern.permute.xlu2 %v260_v8  ;;  %231 = vset.pattern.permute.xlu0 %v258_v3 }
  0x30   :  { %224 = vset.pattern.permute.xlu1 %v259_v6  ;;  %109 = vperm.xlu2 %225, %v23_v2  }
  0x31   :  { %80 = vperm.xlu1 %224, %v22_v7  }
  0x38   :  { %228 = vset.pattern.permute.xlu2 %v261_v11 }
  0x39   :  { %227 = vset.pattern.permute.xlu1 %v260_v8  ;;  %134 = vperm.xlu2 %228, %v23_v2  }
  0x3a   :  { %105 = vperm.xlu1 %227, %v22_v7  }
  0x41   :  { %230 = vset.pattern.permute.xlu2 %v258_v3 }
  0x42   :  { %229 = vset.pattern.permute.xlu1 %v261_v11  ;;  %162 = vperm.xlu2 %230, %v159_v57  }
  0x43   :  { %130 = vperm.xlu1 %229, %v22_v7  }
  0x5d   :  { %v34_v12 = vpop.permute.xlu2 %33 }
  0x5e   :  { %v48_v29 = vmul.f32 %v46_v24, %v34_v12 }
  0x66   :  { %v68_v13 = vpop.permute.xlu2 %67 }
  0x6e   :  { %v29_v14 = vpop.permute.xlu2 %28 }
  0x6f   :  { %v47_v0 = vmul.f32 %v46_v24, %v29_v14 }
  0x74   :  { %v73_v15 = vpop.permute.xlu1 %72 }
  0x75   :  { %v44_v16 = vpop.permute.xlu0 %43 }
  0x76   :  { %v50_v30 = vmul.f32 %v46_v24, %v44_v16 }
  0x78   :  { %v85_v17 = vpop.permute.xlu2 %84  ;;  %v78_v37 = vadd.f32 %v73_v15, %v50_v30 }
  0x79   :  { %v97_v32 = vmul.f32 %v95_v27, %v85_v17 }
  0x7d   :  { %v39_v18 = vpop.permute.xlu0 %38  ;;  %v93_v19 = vpop.permute.xlu1 %92 }
  0x7e   :  { %v49_v33 = vmul.f32 %v46_v24, %v39_v18  ;;  %v99_v35 = vmul.f32 %v95_v27, %v93_v19 }
  0x80   :  { %v77_v40 = vadd.f32 %v68_v13, %v49_v33  ;;  %v103_v44 = vadd.f32 %v99_v35, %v78_v37 }
  0x81   :  { %v58_v20 = vpop.permute.xlu2 %57 }
  0x82   :  { %v75_v2 = vadd.f32 %v58_v20, %v47_v0 }
  0x86   :  { %v89_v21 = vpop.permute.xlu0 %88 }
  0x87   :  { %v118_v22 = vpop.permute.xlu1 %117  ;;  %v98_v36 = vmul.f32 %v95_v27, %v89_v21 }
  0x88   :  { %v124_v38 = vmul.f32 %v120_v31, %v118_v22 }
  0x89   :  { %v102_v46 = vadd.f32 %v98_v36, %v77_v40 }
  0x8a   :  { %v110_v25 = vpop.permute.xlu2 %109  ;;  %v128_v50 = vadd.f32 %v124_v38, %v103_v44 }
  0x8b   :  { %v122_v41 = vmul.f32 %v120_v31, %v110_v25 }
  0x8f   :  { %v114_v26 = vpop.permute.xlu0 %113 }
  0x90   :  { %v63_v28 = vpop.permute.xlu1 %62  ;;  %v123_v42 = vmul.f32 %v120_v31, %v114_v26 }
  0x91   :  { %v76_v34 = vadd.f32 %v63_v28, %v48_v29 }
  0x92   :  { %v127_v51 = vadd.f32 %v123_v42, %v102_v46 }
  0x93   :  { %v101_v43 = vadd.f32 %v97_v32, %v76_v34  ;;  %v135_v45 = vpop.permute.xlu2 %134 }
  0x94   :  { %v147_v52 = vmul.f32 %v145_v39, %v135_v45 }
  0x95   :  { %v126_v54 = vadd.f32 %v122_v41, %v101_v43 }
  0x97   :  { %v151_v59 = vadd.f32 %v147_v52, %v126_v54 }
  0x99   :  { %v139_v47 = vpop.permute.xlu0 %138  ;;  %v155_v62 = vmax.f32 %v151_v59, 0.0 }
  0x9a   :  { %v148_v48 = vmul.f32 %v145_v39, %v139_v47  ;;  %v143_v49 = vpop.permute.xlu1 %142 }
  0x9b   :  { %v149_v53 = vmul.f32 %v145_v39, %v143_v49 }
  0x9c   :  { %v152_v56 = vadd.f32 %v148_v48, %v127_v51  ;;  %v163_v11 = vpop.permute.xlu2 %162 }
  0x9d   :  { %v153_v55 = vadd.f32 %v149_v53, %v128_v50 }
  0x9e   :  { %v156_v60 = vmax.f32 %v152_v56, 0.0 }
  0x9f   :  { %v157_v58 = vmax.f32 %v153_v55, 0.0 }
  0xa1   :  { %181 = vmatpush.msra.mxu0 %v157_v58 }
  0xa3   :  { %v81_v61 = vpop.permute.xlu1 %80  ;;  %182 = vmatpush.msra.mxu0 %v156_v60 }
  0xa4   :  { %v96_v1 = vmul.f32 %v95_v27, %v81_v61 }
  0xa5   :  { %183 = vmatpush.msra.mxu0 %v155_v62 }
  0xa6   :  { %v100_v4 = vadd.f32 %v96_v1, %v75_v2 }
  0xac   :  { %v106_v63 = vpop.permute.xlu1 %105 }
  0xad   :  { %v121_v3 = vmul.f32 %v120_v31, %v106_v63 }
  0xaf   :  { %v125_v6 = vadd.f32 %v121_v3, %v100_v4 }
  0xb5   :  { %v131_v5 = vpop.permute.xlu1 %130 }
  0xb6   :  { %v146_v7 = vmul.f32 %v145_v39, %v131_v5 }
  0xb8   :  { %v150_v8 = vadd.f32 %v146_v7, %v125_v6 }
  0xba   :  { %v154_v9 = vmax.f32 %v150_v8, 0.0 }
  0xbc   :  { %184 = vmatpush.msra.mxu0 %v154_v9 }
  0xbd   :  { %207 = vmatmul.msk.f32.vlgmr.msra.gmra.mxu0 %vm165_vm0, %v158_v10 }
 0x13a   :  { %v186_v12 = vpop.f32.mrf.mxu0 }
 0x13b   :  { %v187_v13 = vadd.f32 %v186_v12, %v163_v11 }
 0x13d   :  { %190 = vst.msk [vmem:[#allocation2] sm:$0x3] %vm189_vm1, %v187_v13 }
 0x13e   :  { %201 = dma.vmem_to_hbm [thread:$0]  %s197_s12, 32, %s199_s15, [#allocation3]  }
 0x13f   :  { %256 = dma.done.wait [#allocation3], 32  }
 0x140   :  { %257 = vsyncadd [#allocation3], 4294967264 }
 0x141   :  { %206 = vsyncpa [#allocation3], 1 }

</bundles_post_ra>
